<compile_context>
chip_gen: v5e
topology: v5e:2x2
jax: 0.10.0
libtpu: 0.0.40
codegen_flags: <defaults>
</compile_context>

<pallas_src>
import functools

import jax
import jax.numpy as jnp
from jax.experimental import pallas as pl
from jax.experimental.pallas import tpu as pltpu


def _round_up(x, m):
    return (x + m - 1) // m * m


def _leaky_relu(x, slope=0.01):
    return jnp.where(x > 0, x, slope * x)


def _layer_norm(x, gamma, beta, eps=1e-6):
    mu = jnp.mean(x, axis=-1, keepdims=True)
    var = jnp.mean(jnp.square(x - mu), axis=-1, keepdims=True)
    return (x - mu) * jax.lax.rsqrt(var + eps) * gamma + beta


def _masked_layer_norm(x, gamma, beta, n_valid, eps=1e-6):
    """LayerNorm over the first `n_valid` lanes of x (remaining lanes are padding -> 0)."""
    lane = jax.lax.broadcasted_iota(jnp.int32, x.shape, 1)
    mask = (lane < n_valid).astype(x.dtype)
    denom = float(n_valid)
    mu = jnp.sum(x * mask, axis=-1, keepdims=True) / denom
    xc = (x - mu) * mask
    var = jnp.sum(xc * xc, axis=-1, keepdims=True) / denom
    return (xc * jax.lax.rsqrt(var + eps) * gamma + beta) * mask


def att_pooling_kernel(feat_ref, batch_ref, hexp_ref, ftile_ref,
                       w1_ref, b1_ref, g1_ref, be1_ref,
                       w2_ref, b2_ref,
                       w3_ref, b3_ref, g3_ref, be3_ref,
                       w4_ref, b4_ref, g4_ref, be4_ref,
                       out_ref,
                       s_acc, pooled_acc,
                       *, num_graphs_pad, drug_dim):
    k = pl.program_id(0)

    @pl.when(k == 0)
    def _init():
        s_acc[...] = jnp.zeros_like(s_acc)
        pooled_acc[...] = jnp.zeros_like(pooled_acc)

    feat = feat_ref[...]            # [tile_N, H]   f32
    bids = batch_ref[...]           # [tile_N, 1]   int32 (padded rows = -1)

    # ---- ATFC: Linear(H,64) -> LeakyReLU -> LN(64) -> Linear(64,heads) -> exp ----
    h = jnp.dot(feat, w1_ref[...], preferred_element_type=jnp.float32) + b1_ref[...]
    h = _leaky_relu(h)
    h = _layer_norm(h, g1_ref[...], be1_ref[...])
    att = jnp.dot(h, w2_ref[...], preferred_element_type=jnp.float32) + b2_ref[...]
    att = jnp.exp(att)              # [tile_N, heads]
    # TODO(synk): matches torch's plain exp (no per-graph max subtraction for stability).

    # ---- lane-dense weighted features: wfeat[n, h*H + d] = att[n, h] * feat[n, d] ----
    # hexp  R: [heads, heads*H], R[h, c] = 1 iff c // H == h   (head broadcast)
    # ftile T: [H,     heads*H], T[d, c] = 1 iff c %  H == d   (feature tiling)
    att_exp = jnp.dot(att, hexp_ref[...], preferred_element_type=jnp.float32)    # [tile_N, heads*H]
    feat_rep = jnp.dot(feat, ftile_ref[...], preferred_element_type=jnp.float32) # [tile_N, heads*H]
    wfeat = att_exp * feat_rep

    # ---- in-kernel segment one-hot (node-major; no transpose of batch ids needed) ----
    gid = jax.lax.broadcasted_iota(jnp.int32, (feat.shape[0], num_graphs_pad), 1)
    onehot_nt = (gid == bids).astype(jnp.float32)            # [tile_N, G_pad]

    # ---- accumulate un-normalised pooled sums and softmax denominators ----
    dn = (((0,), (0,)), ((), ()))   # contract over the node (sublane) axis of both
    s_acc[...] += jax.lax.dot_general(onehot_nt, att, dn,
                                      preferred_element_type=jnp.float32)        # [G_pad, heads]
    pooled_acc[...] += jax.lax.dot_general(onehot_nt, wfeat, dn,
                                           preferred_element_type=jnp.float32)   # [G_pad, heads*H]

    # ---- finalize: normalise + output MLP, once, on the last node tile ----
    @pl.when(k == pl.num_programs(0) - 1)
    def _finalize():
        s = s_acc[...]                                                            # [G_pad, heads]
        inv_s = jnp.where(s > 0.0, pl.reciprocal(s, approx=True), 0.0)            # guard padded graphs
        inv_rep = jnp.dot(inv_s, hexp_ref[...],
                          preferred_element_type=jnp.float32)                     # [G_pad, heads*H]
        pooled = pooled_acc[...] * inv_rep

        o = jnp.dot(pooled, w3_ref[...], preferred_element_type=jnp.float32) + b3_ref[...]
        o = _leaky_relu(o)
        o = _layer_norm(o, g3_ref[...], be3_ref[...])
        o = jnp.dot(o, w4_ref[...], preferred_element_type=jnp.float32) + b4_ref[...]
        o = _leaky_relu(o)
        o = _masked_layer_norm(o, g4_ref[...], be4_ref[...], drug_dim)
        # TODO(synk): training-mode Dropout(p=0.1) not implemented (eval semantics used).
        out_ref[...] = o


def att_pooling(feat, batch, params, *, num_graphs, num_heads, drug_dim, tile_n=None):
    """feat: [N, hidden] f32, batch: [N] int32 graph ids in [0, num_graphs)."""
    feat = feat.astype(jnp.float32)
    N, hidden = feat.shape

    if tile_n is None:
        tile_n = min(_round_up(N, 8), 512)
    n_pad = _round_up(N, tile_n)
    num_tiles = n_pad // tile_n

    g_pad = _round_up(num_graphs, 8)
    out_pad = _round_up(drug_dim, 128)
    hh = num_heads * hidden

    # Inputs padded so every block is (sublane=8, lane=full-or-128)-friendly.
    feat_p = jnp.pad(feat, ((0, n_pad - N), (0, 0)))
    batch_p = jnp.pad(batch.astype(jnp.int32), (0, n_pad - N),
                      constant_values=-1).reshape(n_pad, 1)

    # Constant 0/1 expansion matrices (tiny; loaded once, resident in VMEM).
    hexp = jnp.repeat(jnp.eye(num_heads, dtype=jnp.float32), hidden, axis=1)   # [heads, heads*H]
    ftile = jnp.tile(jnp.eye(hidden, dtype=jnp.float32), (1, num_heads))       # [H, heads*H]

    # Pad the last linear/LN so the output slab is lane-dense; masked LN keeps statistics
    # over the real drug_dim columns only.
    pad_o = ((0, 0), (0, out_pad - drug_dim))
    w4p = jnp.pad(params["w4"], pad_o)
    b4p = jnp.pad(params["b4"], pad_o)
    g4p = jnp.pad(params["g4"], pad_o)
    be4p = jnp.pad(params["be4"], pad_o)

    weight_args = (hexp, ftile,
                   params["w1"], params["b1"], params["g1"], params["be1"],
                   params["w2"], params["b2"],
                   params["w3"], params["b3"], params["g3"], params["be3"],
                   w4p, b4p, g4p, be4p)

    def _full(a):
        return pl.BlockSpec(a.shape, lambda k: (0,) * a.ndim)

    in_specs = [pl.BlockSpec((tile_n, hidden), lambda k: (k, 0)),   # feat tile stream
                pl.BlockSpec((tile_n, 1), lambda k: (k, 0))]        # batch-id tile stream
    in_specs += [_full(a) for a in weight_args]

    kernel = functools.partial(att_pooling_kernel,
                               num_graphs_pad=g_pad, drug_dim=drug_dim)

    out = pl.pallas_call(
        kernel,
        out_shape=jax.ShapeDtypeStruct((g_pad, out_pad), jnp.float32),
        grid_spec=pltpu.PrefetchScalarGridSpec(
            num_scalar_prefetch=0,
            grid=(num_tiles,),
            in_specs=in_specs,
            out_specs=pl.BlockSpec((g_pad, out_pad), lambda k: (0, 0)),
            scratch_shapes=[pltpu.VMEM((g_pad, num_heads), jnp.float32),
                            pltpu.VMEM((g_pad, hh), jnp.float32)]),
        compiler_params=pltpu.CompilerParams(
            dimension_semantics=("arbitrary",),       # node axis is a reduction
            vmem_limit_bytes=32 * 1024 * 1024),       # explicit, v7x-safe
    )(feat_p, batch_p, *weight_args)

    return out[:num_graphs, :drug_dim]


def att_pooling_reference(feat, batch, params, *, num_graphs, num_heads, drug_dim):
    """Pure-JAX reference mirroring the PyTorch module (eval mode)."""
    def leaky(x):
        return jnp.where(x > 0, x, 0.01 * x)

    def ln(x, g, b, eps=1e-6):
        mu = jnp.mean(x, -1, keepdims=True)
        var = jnp.mean((x - mu) ** 2, -1, keepdims=True)
        return (x - mu) / jnp.sqrt(var + eps) * g + b

    h = ln(leaky(feat @ params["w1"] + params["b1"]), params["g1"], params["be1"])
    att = jnp.exp(h @ params["w2"] + params["b2"])                    # [N, heads]
    s = jnp.zeros((num_graphs, num_heads), jnp.float32).at[batch].add(att)
    att = att / s[batch]
    outer = att[:, :, None] * feat[:, None, :]                        # [N, heads, H]
    pooled = jnp.zeros((num_graphs, num_heads, feat.shape[1]), jnp.float32).at[batch].add(outer)
    pooled = pooled.reshape(num_graphs, -1)
    o = ln(leaky(pooled @ params["w3"] + params["b3"]), params["g3"], params["be3"])
    o = ln(leaky(o @ params["w4"] + params["b4"]), params["g4"], params["be4"])
    return o


def init_params(key, hidden_dim, drug_dim, num_heads):
    ks = jax.random.split(key, 4)

    def lin(k, fan_in, fan_out):
        scale = 1.0 / jnp.sqrt(fan_in)
        kw, kb = jax.random.split(k)
        w = jax.random.uniform(kw, (fan_in, fan_out), jnp.float32, -scale, scale)
        b = jax.random.uniform(kb, (1, fan_out), jnp.float32, -scale, scale)
        return w, b

    w1, b1 = lin(ks[0], hidden_dim, 64)
    w2, b2 = lin(ks[1], 64, num_heads)
    w3, b3 = lin(ks[2], num_heads * hidden_dim, hidden_dim)
    w4, b4 = lin(ks[3], hidden_dim, drug_dim)
    return {
        "w1": w1, "b1": b1,
        "g1": jnp.ones((1, 64), jnp.float32), "be1": jnp.zeros((1, 64), jnp.float32),
        "w2": w2, "b2": b2,
        "w3": w3, "b3": b3,
        "g3": jnp.ones((1, hidden_dim), jnp.float32), "be3": jnp.zeros((1, hidden_dim), jnp.float32),
        "w4": w4, "b4": b4,
        "g4": jnp.ones((1, drug_dim), jnp.float32), "be4": jnp.zeros((1, drug_dim), jnp.float32),
    }


if __name__ == "__main__":
    hidden_dim, drug_dim, num_heads = 32, 16, 4
    N, num_graphs = 16, 2

    key = jax.random.PRNGKey(0)
    kf, kp = jax.random.split(key)
    feat = jax.random.normal(kf, (N, hidden_dim), dtype=jnp.float32)
    batch = jnp.array([0] * 8 + [1] * 8, dtype=jnp.int32)   # 2 graphs, 8 nodes each

    params = init_params(kp, hidden_dim, drug_dim, num_heads)

    out = att_pooling(feat, batch, params, num_graphs=num_graphs,
                      num_heads=num_heads, drug_dim=drug_dim, tile_n=8)
    out = jax.block_until_ready(out)
    assert out.shape == (num_graphs, drug_dim)
    assert bool(jnp.all(jnp.isfinite(out)))

    ref = att_pooling_reference(feat, batch, params, num_graphs=num_graphs,
                                num_heads=num_heads, drug_dim=drug_dim)
    assert bool(jnp.allclose(out, ref, rtol=1e-1, atol=1e-1)), float(jnp.max(jnp.abs(out - ref)))

    print("KERNEL_OK")
</pallas_src>

<mosaic_0001>
module attributes {stable_mosaic.version = 11 : i64} {
  func.func @att_pooling_kernel(%arg0: i32, %arg1: memref<8x32xf32, #tpu.memory_space<vmem>>, %arg2: memref<8x1xi32, #tpu.memory_space<vmem>>, %arg3: memref<4x128xf32, #tpu.memory_space<vmem>>, %arg4: memref<32x128xf32, #tpu.memory_space<vmem>>, %arg5: memref<32x64xf32, #tpu.memory_space<vmem>>, %arg6: memref<1x64xf32, #tpu.memory_space<vmem>>, %arg7: memref<1x64xf32, #tpu.memory_space<vmem>>, %arg8: memref<1x64xf32, #tpu.memory_space<vmem>>, %arg9: memref<64x4xf32, #tpu.memory_space<vmem>>, %arg10: memref<1x4xf32, #tpu.memory_space<vmem>>, %arg11: memref<128x32xf32, #tpu.memory_space<vmem>>, %arg12: memref<1x32xf32, #tpu.memory_space<vmem>>, %arg13: memref<1x32xf32, #tpu.memory_space<vmem>>, %arg14: memref<1x32xf32, #tpu.memory_space<vmem>>, %arg15: memref<32x128xf32, #tpu.memory_space<vmem>>, %arg16: memref<1x128xf32, #tpu.memory_space<vmem>>, %arg17: memref<1x128xf32, #tpu.memory_space<vmem>>, %arg18: memref<1x128xf32, #tpu.memory_space<vmem>>, %arg19: memref<8x128xf32, #tpu.memory_space<vmem>>, %arg20: memref<8x4xf32, #tpu.memory_space<vmem>>, %arg21: memref<8x128xf32, #tpu.memory_space<vmem>>) attributes {dimension_semantics = [#tpu.dimension_semantics<arbitrary>], iteration_bounds = array<i64: 2>, scalar_prefetch = 0 : i64, scratch_operands = 2 : i64, tpu.core_type = #tpu.core_type<tc>, window_params = [{transform_indices = @transform_0, window_bounds = array<i64: 8, 32>}, {transform_indices = @transform_1, window_bounds = array<i64: 8, 1>}, {pipeline_mode = #tpu.pipeline_mode<synchronous>, transform_indices = @transform_2, window_bounds = array<i64: 4, 128>}, {pipeline_mode = #tpu.pipeline_mode<synchronous>, transform_indices = @transform_3, window_bounds = array<i64: 32, 128>}, {pipeline_mode = #tpu.pipeline_mode<synchronous>, transform_indices = @transform_4, window_bounds = array<i64: 32, 64>}, {pipeline_mode = #tpu.pipeline_mode<synchronous>, transform_indices = @transform_5, window_bounds = array<i64: 1, 64>}, {pipeline_mode = #tpu.pipeline_mode<synchronous>, transform_indices = @transform_6, window_bounds = array<i64: 1, 64>}, {pipeline_mode = #tpu.pipeline_mode<synchronous>, transform_indices = @transform_7, window_bounds = array<i64: 1, 64>}, {pipeline_mode = #tpu.pipeline_mode<synchronous>, transform_indices = @transform_8, window_bounds = array<i64: 64, 4>}, {pipeline_mode = #tpu.pipeline_mode<synchronous>, transform_indices = @transform_9, window_bounds = array<i64: 1, 4>}, {pipeline_mode = #tpu.pipeline_mode<synchronous>, transform_indices = @transform_10, window_bounds = array<i64: 128, 32>}, {pipeline_mode = #tpu.pipeline_mode<synchronous>, transform_indices = @transform_11, window_bounds = array<i64: 1, 32>}, {pipeline_mode = #tpu.pipeline_mode<synchronous>, transform_indices = @transform_12, window_bounds = array<i64: 1, 32>}, {pipeline_mode = #tpu.pipeline_mode<synchronous>, transform_indices = @transform_13, window_bounds = array<i64: 1, 32>}, {pipeline_mode = #tpu.pipeline_mode<synchronous>, transform_indices = @transform_14, window_bounds = array<i64: 32, 128>}, {pipeline_mode = #tpu.pipeline_mode<synchronous>, transform_indices = @transform_15, window_bounds = array<i64: 1, 128>}, {pipeline_mode = #tpu.pipeline_mode<synchronous>, transform_indices = @transform_16, window_bounds = array<i64: 1, 128>}, {pipeline_mode = #tpu.pipeline_mode<synchronous>, transform_indices = @transform_17, window_bounds = array<i64: 1, 128>}, {pipeline_mode = #tpu.pipeline_mode<synchronous>, transform_indices = @transform_18, window_bounds = array<i64: 8, 128>}]} {
    %c0_i32 = arith.constant 0 : i32
    %0 = arith.cmpi eq, %arg0, %c0_i32 : i32
    %1 = arith.extui %0 : i1 to i32
    %c0_i32_0 = arith.constant 0 : i32
    %2 = arith.cmpi ne, %1, %c0_i32_0 : i32
    scf.if %2 {
      %cst_41 = arith.constant 0.000000e+00 : f32
      %66 = vector.broadcast %cst_41 : f32 to vector<8x4xf32>
      %c0_42 = arith.constant 0 : index
      %c0_43 = arith.constant 0 : index
      %67 = vector.load %arg20[%c0_42, %c0_43] : memref<8x4xf32, #tpu.memory_space<vmem>>, vector<8x4xf32>
      tpu.vector_store %arg20[%c0_42, %c0_43], %66 {strides = array<i32>} : memref<8x4xf32, #tpu.memory_space<vmem>>, vector<8x4xf32>,
      %cst_44 = arith.constant 0.000000e+00 : f32
      %68 = vector.broadcast %cst_44 : f32 to vector<8x128xf32>
      %c0_45 = arith.constant 0 : index
      %c0_46 = arith.constant 0 : index
      %69 = vector.load %arg21[%c0_45, %c0_46] : memref<8x128xf32, #tpu.memory_space<vmem>>, vector<8x128xf32>
      tpu.vector_store %arg21[%c0_45, %c0_46], %68 {strides = array<i32>} : memref<8x128xf32, #tpu.memory_space<vmem>>, vector<8x128xf32>,
    } else {
    }
    %c0 = arith.constant 0 : index
    %c0_1 = arith.constant 0 : index
    %3 = vector.load %arg1[%c0, %c0_1] : memref<8x32xf32, #tpu.memory_space<vmem>>, vector<8x32xf32>
    %c0_2 = arith.constant 0 : index
    %c0_3 = arith.constant 0 : index
    %4 = vector.load %arg2[%c0_2, %c0_3] : memref<8x1xi32, #tpu.memory_space<vmem>>, vector<8x1xi32>
    %c0_4 = arith.constant 0 : index
    %c0_5 = arith.constant 0 : index
    %5 = vector.load %arg5[%c0_4, %c0_5] : memref<32x64xf32, #tpu.memory_space<vmem>>, vector<32x64xf32>
    %cst = arith.constant dense<0.000000e+00> : vector<8x64xf32>
    %6 = tpu.matmul %3, %5, %cst {dimension_numbers = #tpu.dot_dimension_numbers<[1], [0], [0], [1], [0, 0, 1, 1], [], []>} : vector<8x32xf32>, vector<32x64xf32>, vector<8x64xf32> -> vector<8x64xf32>
    %c0_6 = arith.constant 0 : index
    %c0_7 = arith.constant 0 : index
    %7 = vector.load %arg6[%c0_6, %c0_7] : memref<1x64xf32, #tpu.memory_space<vmem>>, vector<1x64xf32>
    %8 = vector.broadcast %7 : vector<1x64xf32> to vector<8x64xf32>
    %9 = arith.addf %6, %8 : vector<8x64xf32>
    %cst_8 = arith.constant 0.000000e+00 : f32
    %10 = vector.broadcast %cst_8 : f32 to vector<8x64xf32>
    %11 = arith.cmpf ogt, %9, %10 : vector<8x64xf32>
    %cst_9 = arith.constant 0.00999999977 : f32
    %12 = vector.broadcast %cst_9 : f32 to vector<8x64xf32>
    %13 = arith.mulf %12, %9 : vector<8x64xf32>
    %14 = arith.select %11, %9, %13 : vector<8x64xi1>, vector<8x64xf32>
    %c0_10 = arith.constant 0 : index
    %c0_11 = arith.constant 0 : index
    %15 = vector.load %arg7[%c0_10, %c0_11] : memref<1x64xf32, #tpu.memory_space<vmem>>, vector<1x64xf32>
    %c0_12 = arith.constant 0 : index
    %c0_13 = arith.constant 0 : index
    %16 = vector.load %arg8[%c0_12, %c0_13] : memref<1x64xf32, #tpu.memory_space<vmem>>, vector<1x64xf32>
    %cst_14 = arith.constant dense<0.000000e+00> : vector<8xf32>
    %17 = vector.multi_reduction <add>, %14, %cst_14 [1] : vector<8x64xf32> to vector<8xf32>
    %18 = vector.shape_cast %17 : vector<8xf32> to vector<8x1xf32>
    %cst_15 = arith.constant 6.400000e+01 : f32
    %19 = vector.broadcast %cst_15 : f32 to vector<8x1xf32>
    %20 = arith.divf %18, %19 : vector<8x1xf32>
    %21 = vector.broadcast %20 : vector<8x1xf32> to vector<8x64xf32>
    %22 = arith.subf %14, %21 : vector<8x64xf32>
    %23 = arith.mulf %22, %22 : vector<8x64xf32>
    %cst_16 = arith.constant dense<0.000000e+00> : vector<8xf32>
    %24 = vector.multi_reduction <add>, %23, %cst_16 [1] : vector<8x64xf32> to vector<8xf32>
    %25 = vector.shape_cast %24 : vector<8xf32> to vector<8x1xf32>
    %cst_17 = arith.constant 6.400000e+01 : f32
    %26 = vector.broadcast %cst_17 : f32 to vector<8x1xf32>
    %27 = arith.divf %25, %26 : vector<8x1xf32>
    %28 = vector.broadcast %20 : vector<8x1xf32> to vector<8x64xf32>
    %29 = arith.subf %14, %28 : vector<8x64xf32>
    %cst_18 = arith.constant 9.99999997E-7 : f32
    %30 = vector.broadcast %cst_18 : f32 to vector<8x1xf32>
    %31 = arith.addf %27, %30 : vector<8x1xf32>
    %32 = math.rsqrt %31 : vector<8x1xf32>
    %33 = vector.broadcast %32 : vector<8x1xf32> to vector<8x64xf32>
    %34 = arith.mulf %29, %33 : vector<8x64xf32>
    %35 = vector.broadcast %15 : vector<1x64xf32> to vector<8x64xf32>
    %36 = arith.mulf %34, %35 : vector<8x64xf32>
    %37 = vector.broadcast %16 : vector<1x64xf32> to vector<8x64xf32>
    %38 = arith.addf %36, %37 : vector<8x64xf32>
    %c0_19 = arith.constant 0 : index
    %c0_20 = arith.constant 0 : index
    %39 = vector.load %arg9[%c0_19, %c0_20] : memref<64x4xf32, #tpu.memory_space<vmem>>, vector<64x4xf32>
    %cst_21 = arith.constant dense<0.000000e+00> : vector<8x4xf32>
    %40 = tpu.matmul %38, %39, %cst_21 {dimension_numbers = #tpu.dot_dimension_numbers<[1], [0], [0], [1], [0, 0, 1, 1], [], []>} : vector<8x64xf32>, vector<64x4xf32>, vector<8x4xf32> -> vector<8x4xf32>
    %c0_22 = arith.constant 0 : index
    %c0_23 = arith.constant 0 : index
    %41 = vector.load %arg10[%c0_22, %c0_23] : memref<1x4xf32, #tpu.memory_space<vmem>>, vector<1x4xf32>
    %42 = vector.broadcast %41 : vector<1x4xf32> to vector<8x4xf32>
    %43 = arith.addf %40, %42 : vector<8x4xf32>
    %44 = math.exp %43 : vector<8x4xf32>
    %c0_24 = arith.constant 0 : index
    %c0_25 = arith.constant 0 : index
    %45 = vector.load %arg3[%c0_24, %c0_25] : memref<4x128xf32, #tpu.memory_space<vmem>>, vector<4x128xf32>
    %cst_26 = arith.constant dense<0.000000e+00> : vector<8x128xf32>
    %46 = tpu.matmul %44, %45, %cst_26 {dimension_numbers = #tpu.dot_dimension_numbers<[1], [0], [0], [1], [0, 0, 1, 1], [], []>} : vector<8x4xf32>, vector<4x128xf32>, vector<8x128xf32> -> vector<8x128xf32>
    %c0_27 = arith.constant 0 : index
    %c0_28 = arith.constant 0 : index
    %47 = vector.load %arg4[%c0_27, %c0_28] : memref<32x128xf32, #tpu.memory_space<vmem>>, vector<32x128xf32>
    %cst_29 = arith.constant dense<0.000000e+00> : vector<8x128xf32>
    %48 = tpu.matmul %3, %47, %cst_29 {dimension_numbers = #tpu.dot_dimension_numbers<[1], [0], [0], [1], [0, 0, 1, 1], [], []>} : vector<8x32xf32>, vector<32x128xf32>, vector<8x128xf32> -> vector<8x128xf32>
    %49 = arith.mulf %46, %48 : vector<8x128xf32>
    %50 = tpu.iota {dimensions = array<i32: 1>} : vector<8x8xi32>
    %51 = vector.broadcast %4 : vector<8x1xi32> to vector<8x8xi32>
    %52 = arith.cmpi eq, %50, %51 : vector<8x8xi32>
    %53 = arith.extui %52 : vector<8x8xi1> to vector<8x8xi32>
    %54 = arith.sitofp %53 : vector<8x8xi32> to vector<8x8xf32>
    %c0_30 = arith.constant 0 : index
    %c0_31 = arith.constant 0 : index
    %55 = vector.load %arg20[%c0_30, %c0_31] : memref<8x4xf32, #tpu.memory_space<vmem>>, vector<8x4xf32>
    %cst_32 = arith.constant dense<0.000000e+00> : vector<8x4xf32>
    %56 = tpu.matmul %54, %44, %cst_32 {dimension_numbers = #tpu.dot_dimension_numbers<[0], [0], [1], [1], [0, 1, 1, 1], [], []>} : vector<8x8xf32>, vector<8x4xf32>, vector<8x4xf32> -> vector<8x4xf32>
    %57 = arith.addf %55, %56 : vector<8x4xf32>
    %c0_33 = arith.constant 0 : index
    %c0_34 = arith.constant 0 : index
    %58 = vector.load %arg20[%c0_33, %c0_34] : memref<8x4xf32, #tpu.memory_space<vmem>>, vector<8x4xf32>
    tpu.vector_store %arg20[%c0_33, %c0_34], %57 {strides = array<i32>} : memref<8x4xf32, #tpu.memory_space<vmem>>, vector<8x4xf32>,
    %c0_35 = arith.constant 0 : index
    %c0_36 = arith.constant 0 : index
    %59 = vector.load %arg21[%c0_35, %c0_36] : memref<8x128xf32, #tpu.memory_space<vmem>>, vector<8x128xf32>
    %cst_37 = arith.constant dense<0.000000e+00> : vector<8x128xf32>
    %60 = tpu.matmul %54, %49, %cst_37 {dimension_numbers = #tpu.dot_dimension_numbers<[0], [0], [1], [1], [0, 1, 1, 1], [], []>} : vector<8x8xf32>, vector<8x128xf32>, vector<8x128xf32> -> vector<8x128xf32>
    %61 = arith.addf %59, %60 : vector<8x128xf32>
    %c0_38 = arith.constant 0 : index
    %c0_39 = arith.constant 0 : index
    %62 = vector.load %arg21[%c0_38, %c0_39] : memref<8x128xf32, #tpu.memory_space<vmem>>, vector<8x128xf32>
    tpu.vector_store %arg21[%c0_38, %c0_39], %61 {strides = array<i32>} : memref<8x128xf32, #tpu.memory_space<vmem>>, vector<8x128xf32>,
    %c1_i32 = arith.constant 1 : i32
    %63 = arith.cmpi eq, %arg0, %c1_i32 : i32
    %64 = arith.extui %63 : i1 to i32
    %c0_i32_40 = arith.constant 0 : i32
    %65 = arith.cmpi ne, %64, %c0_i32_40 : i32
    scf.if %65 {
      %c0_41 = arith.constant 0 : index
      %c0_42 = arith.constant 0 : index
      %66 = vector.load %arg20[%c0_41, %c0_42] : memref<8x4xf32, #tpu.memory_space<vmem>>, vector<8x4xf32>
      %cst_43 = arith.constant 0.000000e+00 : f32
      %67 = vector.broadcast %cst_43 : f32 to vector<8x4xf32>
      %68 = arith.cmpf ogt, %66, %67 : vector<8x4xf32>
      %69 = tpu.reciprocal %66 {approx = true} : vector<8x4xf32> -> vector<8x4xf32>
      %cst_44 = arith.constant 0.000000e+00 : f32
      %70 = vector.broadcast %cst_44 : f32 to vector<8x4xf32>
      %71 = arith.select %68, %69, %70 : vector<8x4xi1>, vector<8x4xf32>
      %c0_45 = arith.constant 0 : index
      %c0_46 = arith.constant 0 : index
      %72 = vector.load %arg3[%c0_45, %c0_46] : memref<4x128xf32, #tpu.memory_space<vmem>>, vector<4x128xf32>
      %cst_47 = arith.constant dense<0.000000e+00> : vector<8x128xf32>
      %73 = tpu.matmul %71, %72, %cst_47 {dimension_numbers = #tpu.dot_dimension_numbers<[1], [0], [0], [1], [0, 0, 1, 1], [], []>} : vector<8x4xf32>, vector<4x128xf32>, vector<8x128xf32> -> vector<8x128xf32>
      %c0_48 = arith.constant 0 : index
      %c0_49 = arith.constant 0 : index
      %74 = vector.load %arg21[%c0_48, %c0_49] : memref<8x128xf32, #tpu.memory_space<vmem>>, vector<8x128xf32>
      %75 = arith.mulf %74, %73 : vector<8x128xf32>
      %c0_50 = arith.constant 0 : index
      %c0_51 = arith.constant 0 : index
      %76 = vector.load %arg11[%c0_50, %c0_51] : memref<128x32xf32, #tpu.memory_space<vmem>>, vector<128x32xf32>
      %cst_52 = arith.constant dense<0.000000e+00> : vector<8x32xf32>
      %77 = tpu.matmul %75, %76, %cst_52 {dimension_numbers = #tpu.dot_dimension_numbers<[1], [0], [0], [1], [0, 0, 1, 1], [], []>} : vector<8x128xf32>, vector<128x32xf32>, vector<8x32xf32> -> vector<8x32xf32>
      %c0_53 = arith.constant 0 : index
      %c0_54 = arith.constant 0 : index
      %78 = vector.load %arg12[%c0_53, %c0_54] : memref<1x32xf32, #tpu.memory_space<vmem>>, vector<1x32xf32>
      %79 = vector.broadcast %78 : vector<1x32xf32> to vector<8x32xf32>
      %80 = arith.addf %77, %79 : vector<8x32xf32>
      %cst_55 = arith.constant 0.000000e+00 : f32
      %81 = vector.broadcast %cst_55 : f32 to vector<8x32xf32>
      %82 = arith.cmpf ogt, %80, %81 : vector<8x32xf32>
      %cst_56 = arith.constant 0.00999999977 : f32
      %83 = vector.broadcast %cst_56 : f32 to vector<8x32xf32>
      %84 = arith.mulf %83, %80 : vector<8x32xf32>
      %85 = arith.select %82, %80, %84 : vector<8x32xi1>, vector<8x32xf32>
      %c0_57 = arith.constant 0 : index
      %c0_58 = arith.constant 0 : index
      %86 = vector.load %arg13[%c0_57, %c0_58] : memref<1x32xf32, #tpu.memory_space<vmem>>, vector<1x32xf32>
      %c0_59 = arith.constant 0 : index
      %c0_60 = arith.constant 0 : index
      %87 = vector.load %arg14[%c0_59, %c0_60] : memref<1x32xf32, #tpu.memory_space<vmem>>, vector<1x32xf32>
      %cst_61 = arith.constant dense<0.000000e+00> : vector<8xf32>
      %88 = vector.multi_reduction <add>, %85, %cst_61 [1] : vector<8x32xf32> to vector<8xf32>
      %89 = vector.shape_cast %88 : vector<8xf32> to vector<8x1xf32>
      %cst_62 = arith.constant 3.200000e+01 : f32
      %90 = vector.broadcast %cst_62 : f32 to vector<8x1xf32>
      %91 = arith.divf %89, %90 : vector<8x1xf32>
      %92 = vector.broadcast %91 : vector<8x1xf32> to vector<8x32xf32>
      %93 = arith.subf %85, %92 : vector<8x32xf32>
      %94 = arith.mulf %93, %93 : vector<8x32xf32>
      %cst_63 = arith.constant dense<0.000000e+00> : vector<8xf32>
      %95 = vector.multi_reduction <add>, %94, %cst_63 [1] : vector<8x32xf32> to vector<8xf32>
      %96 = vector.shape_cast %95 : vector<8xf32> to vector<8x1xf32>
      %cst_64 = arith.constant 3.200000e+01 : f32
      %97 = vector.broadcast %cst_64 : f32 to vector<8x1xf32>
      %98 = arith.divf %96, %97 : vector<8x1xf32>
      %99 = vector.broadcast %91 : vector<8x1xf32> to vector<8x32xf32>
      %100 = arith.subf %85, %99 : vector<8x32xf32>
      %cst_65 = arith.constant 9.99999997E-7 : f32
      %101 = vector.broadcast %cst_65 : f32 to vector<8x1xf32>
      %102 = arith.addf %98, %101 : vector<8x1xf32>
      %103 = math.rsqrt %102 : vector<8x1xf32>
      %104 = vector.broadcast %103 : vector<8x1xf32> to vector<8x32xf32>
      %105 = arith.mulf %100, %104 : vector<8x32xf32>
      %106 = vector.broadcast %86 : vector<1x32xf32> to vector<8x32xf32>
      %107 = arith.mulf %105, %106 : vector<8x32xf32>
      %108 = vector.broadcast %87 : vector<1x32xf32> to vector<8x32xf32>
      %109 = arith.addf %107, %108 : vector<8x32xf32>
      %c0_66 = arith.constant 0 : index
      %c0_67 = arith.constant 0 : index
      %110 = vector.load %arg15[%c0_66, %c0_67] : memref<32x128xf32, #tpu.memory_space<vmem>>, vector<32x128xf32>
      %cst_68 = arith.constant dense<0.000000e+00> : vector<8x128xf32>
      %111 = tpu.matmul %109, %110, %cst_68 {dimension_numbers = #tpu.dot_dimension_numbers<[1], [0], [0], [1], [0, 0, 1, 1], [], []>} : vector<8x32xf32>, vector<32x128xf32>, vector<8x128xf32> -> vector<8x128xf32>
      %c0_69 = arith.constant 0 : index
      %c0_70 = arith.constant 0 : index
      %112 = vector.load %arg16[%c0_69, %c0_70] : memref<1x128xf32, #tpu.memory_space<vmem>>, vector<1x128xf32>
      %113 = vector.broadcast %112 : vector<1x128xf32> to vector<8x128xf32>
      %114 = arith.addf %111, %113 : vector<8x128xf32>
      %cst_71 = arith.constant 0.000000e+00 : f32
      %115 = vector.broadcast %cst_71 : f32 to vector<8x128xf32>
      %116 = arith.cmpf ogt, %114, %115 : vector<8x128xf32>
      %cst_72 = arith.constant 0.00999999977 : f32
      %117 = vector.broadcast %cst_72 : f32 to vector<8x128xf32>
      %118 = arith.mulf %117, %114 : vector<8x128xf32>
      %119 = arith.select %116, %114, %118 : vector<8x128xi1>, vector<8x128xf32>
      %c0_73 = arith.constant 0 : index
      %c0_74 = arith.constant 0 : index
      %120 = vector.load %arg17[%c0_73, %c0_74] : memref<1x128xf32, #tpu.memory_space<vmem>>, vector<1x128xf32>
      %c0_75 = arith.constant 0 : index
      %c0_76 = arith.constant 0 : index
      %121 = vector.load %arg18[%c0_75, %c0_76] : memref<1x128xf32, #tpu.memory_space<vmem>>, vector<1x128xf32>
      %122 = tpu.iota {dimensions = array<i32: 1>} : vector<8x128xi32>
      %c16_i32 = arith.constant 16 : i32
      %123 = vector.broadcast %c16_i32 : i32 to vector<8x128xi32>
      %124 = arith.cmpi slt, %122, %123 : vector<8x128xi32>
      %125 = arith.extui %124 : vector<8x128xi1> to vector<8x128xi32>
      %126 = arith.sitofp %125 : vector<8x128xi32> to vector<8x128xf32>
      %127 = arith.mulf %119, %126 : vector<8x128xf32>
      %cst_77 = arith.constant dense<0.000000e+00> : vector<8xf32>
      %128 = vector.multi_reduction <add>, %127, %cst_77 [1] : vector<8x128xf32> to vector<8xf32>
      %129 = vector.shape_cast %128 : vector<8xf32> to vector<8x1xf32>
      %cst_78 = arith.constant 1.600000e+01 : f32
      %130 = vector.broadcast %cst_78 : f32 to vector<8x1xf32>
      %131 = arith.divf %129, %130 : vector<8x1xf32>
      %132 = vector.broadcast %131 : vector<8x1xf32> to vector<8x128xf32>
      %133 = arith.subf %119, %132 : vector<8x128xf32>
      %134 = arith.mulf %133, %126 : vector<8x128xf32>
      %135 = arith.mulf %134, %134 : vector<8x128xf32>
      %cst_79 = arith.constant dense<0.000000e+00> : vector<8xf32>
      %136 = vector.multi_reduction <add>, %135, %cst_79 [1] : vector<8x128xf32> to vector<8xf32>
      %137 = vector.shape_cast %136 : vector<8xf32> to vector<8x1xf32>
      %cst_80 = arith.constant 1.600000e+01 : f32
      %138 = vector.broadcast %cst_80 : f32 to vector<8x1xf32>
      %139 = arith.divf %137, %138 : vector<8x1xf32>
      %cst_81 = arith.constant 9.99999997E-7 : f32
      %140 = vector.broadcast %cst_81 : f32 to vector<8x1xf32>
      %141 = arith.addf %139, %140 : vector<8x1xf32>
      %142 = math.rsqrt %141 : vector<8x1xf32>
      %143 = vector.broadcast %142 : vector<8x1xf32> to vector<8x128xf32>
      %144 = arith.mulf %134, %143 : vector<8x128xf32>
      %145 = vector.broadcast %120 : vector<1x128xf32> to vector<8x128xf32>
      %146 = arith.mulf %144, %145 : vector<8x128xf32>
      %147 = vector.broadcast %121 : vector<1x128xf32> to vector<8x128xf32>
      %148 = arith.addf %146, %147 : vector<8x128xf32>
      %149 = arith.mulf %148, %126 : vector<8x128xf32>
      %c0_82 = arith.constant 0 : index
      %c0_83 = arith.constant 0 : index
      %150 = vector.load %arg19[%c0_82, %c0_83] : memref<8x128xf32, #tpu.memory_space<vmem>>, vector<8x128xf32>
      tpu.vector_store %arg19[%c0_82, %c0_83], %149 {strides = array<i32>} : memref<8x128xf32, #tpu.memory_space<vmem>>, vector<8x128xf32>,
    } else {
    }
    return
  }
  func.func @transform_0(%arg0: i32) -> (i32, i32) {
    %c0_i32 = arith.constant 0 : i32
    %c0_i32_0 = arith.constant 0 : i32
    return %arg0, %c0_i32 : i32, i32
  }
  func.func @transform_1(%arg0: i32) -> (i32, i32) {
    %c0_i32 = arith.constant 0 : i32
    %c0_i32_0 = arith.constant 0 : i32
    return %arg0, %c0_i32 : i32, i32
  }
  func.func @transform_2(%arg0: i32) -> (i32, i32) {
    %c0_i32 = arith.constant 0 : i32
    %c0_i32_0 = arith.constant 0 : i32
    %c0_i32_1 = arith.constant 0 : i32
    return %c0_i32, %c0_i32_0 : i32, i32
  }
  func.func @transform_3(%arg0: i32) -> (i32, i32) {
    %c0_i32 = arith.constant 0 : i32
    %c0_i32_0 = arith.constant 0 : i32
    %c0_i32_1 = arith.constant 0 : i32
    return %c0_i32, %c0_i32_0 : i32, i32
  }
  func.func @transform_4(%arg0: i32) -> (i32, i32) {
    %c0_i32 = arith.constant 0 : i32
    %c0_i32_0 = arith.constant 0 : i32
    %c0_i32_1 = arith.constant 0 : i32
    return %c0_i32, %c0_i32_0 : i32, i32
  }
  func.func @transform_5(%arg0: i32) -> (i32, i32) {
    %c0_i32 = arith.constant 0 : i32
    %c0_i32_0 = arith.constant 0 : i32
    %c0_i32_1 = arith.constant 0 : i32
    return %c0_i32, %c0_i32_0 : i32, i32
  }
  func.func @transform_6(%arg0: i32) -> (i32, i32) {
    %c0_i32 = arith.constant 0 : i32
    %c0_i32_0 = arith.constant 0 : i32
    %c0_i32_1 = arith.constant 0 : i32
    return %c0_i32, %c0_i32_0 : i32, i32
  }
  func.func @transform_7(%arg0: i32) -> (i32, i32) {
    %c0_i32 = arith.constant 0 : i32
    %c0_i32_0 = arith.constant 0 : i32
    %c0_i32_1 = arith.constant 0 : i32
    return %c0_i32, %c0_i32_0 : i32, i32
  }
  func.func @transform_8(%arg0: i32) -> (i32, i32) {
    %c0_i32 = arith.constant 0 : i32
    %c0_i32_0 = arith.constant 0 : i32
    %c0_i32_1 = arith.constant 0 : i32
    return %c0_i32, %c0_i32_0 : i32, i32
  }
  func.func @transform_9(%arg0: i32) -> (i32, i32) {
    %c0_i32 = arith.constant 0 : i32
    %c0_i32_0 = arith.constant 0 : i32
    %c0_i32_1 = arith.constant 0 : i32
    return %c0_i32, %c0_i32_0 : i32, i32
  }
  func.func @transform_10(%arg0: i32) -> (i32, i32) {
    %c0_i32 = arith.constant 0 : i32
    %c0_i32_0 = arith.constant 0 : i32
    %c0_i32_1 = arith.constant 0 : i32
    return %c0_i32, %c0_i32_0 : i32, i32
  }
  func.func @transform_11(%arg0: i32) -> (i32, i32) {
    %c0_i32 = arith.constant 0 : i32
    %c0_i32_0 = arith.constant 0 : i32
    %c0_i32_1 = arith.constant 0 : i32
    return %c0_i32, %c0_i32_0 : i32, i32
  }
  func.func @transform_12(%arg0: i32) -> (i32, i32) {
    %c0_i32 = arith.constant 0 : i32
    %c0_i32_0 = arith.constant 0 : i32
    %c0_i32_1 = arith.constant 0 : i32
    return %c0_i32, %c0_i32_0 : i32, i32
  }
  func.func @transform_13(%arg0: i32) -> (i32, i32) {
    %c0_i32 = arith.constant 0 : i32
    %c0_i32_0 = arith.constant 0 : i32
    %c0_i32_1 = arith.constant 0 : i32
    return %c0_i32, %c0_i32_0 : i32, i32
  }
  func.func @transform_14(%arg0: i32) -> (i32, i32) {
    %c0_i32 = arith.constant 0 : i32
    %c0_i32_0 = arith.constant 0 : i32
    %c0_i32_1 = arith.constant 0 : i32
    return %c0_i32, %c0_i32_0 : i32, i32
  }
  func.func @transform_15(%arg0: i32) -> (i32, i32) {
    %c0_i32 = arith.constant 0 : i32
    %c0_i32_0 = arith.constant 0 : i32
    %c0_i32_1 = arith.constant 0 : i32
    return %c0_i32, %c0_i32_0 : i32, i32
  }
  func.func @transform_16(%arg0: i32) -> (i32, i32) {
    %c0_i32 = arith.constant 0 : i32
    %c0_i32_0 = arith.constant 0 : i32
    %c0_i32_1 = arith.constant 0 : i32
    return %c0_i32, %c0_i32_0 : i32, i32
  }
  func.func @transform_17(%arg0: i32) -> (i32, i32) {
    %c0_i32 = arith.constant 0 : i32
    %c0_i32_0 = arith.constant 0 : i32
    %c0_i32_1 = arith.constant 0 : i32
    return %c0_i32, %c0_i32_0 : i32, i32
  }
  func.func @transform_18(%arg0: i32) -> (i32, i32) {
    %c0_i32 = arith.constant 0 : i32
    %c0_i32_0 = arith.constant 0 : i32
    %c0_i32_1 = arith.constant 0 : i32
    return %c0_i32, %c0_i32_0 : i32, i32
  }
}

</mosaic_0001>

<bundles_post_ra>
// kernel: tpu_custom_call.1
= control target key start
LH: loop header
LB: loop body
LE: loop exit
PB: predicated region body
PF: predicated region fallthrough
CT: control target
= control target key end

     0   :  { %s1510_s0 = inlined_call_operand.vmem [shape: f32[16,32], index: 0, kind: input, shape index: {}]   ;;  %s1511_s1 = inlined_call_operand.vmem [shape: s32[16,1], index: 1, kind: input, shape index: {}]   ;;  %s1512_s2 = inlined_call_operand.vmem [shape: f32[4,128], index: 2, kind: input, shape index: {}]   ;;  %s1513_s3 = inlined_call_operand.vmem [shape: f32[32,128], index: 3, kind: input, shape index: {}]   ;;  %s1514_s4 = inlined_call_operand.vmem [shape: f32[32,64], index: 4, kind: input, shape index: {}]   ;;  %s1515_s5 = inlined_call_operand.vmem [shape: f32[1,64], index: 5, kind: input, shape index: {}]   ;;  %s1516_s6 = inlined_call_operand.vmem [shape: f32[1,64], index: 6, kind: input, shape index: {}]   ;;  %s1517_s7 = inlined_call_operand.vmem [shape: f32[1,64], index: 7, kind: input, shape index: {}]   ;;  %s1518_s8 = inlined_call_operand.vmem [shape: f32[64,4], index: 8, kind: input, shape index: {}]   ;;  %s1519_s9 = inlined_call_operand.vmem [shape: f32[1,4], index: 9, kind: input, shape index: {}]   ;;  %s1520_s10 = inlined_call_operand.vmem [shape: f32[128,32], index: 10, kind: input, shape index: {}]   ;;  %s1521_s11 = inlined_call_operand.vmem [shape: f32[1,32], index: 11, kind: input, shape index: {}]   ;;  %s1522_s12 = inlined_call_operand.vmem [shape: f32[1,32], index: 12, kind: input, shape index: {}]   ;;  %s1523_s13 = inlined_call_operand.vmem [shape: f32[1,32], index: 13, kind: input, shape index: {}]   ;;  %s1524_s14 = inlined_call_operand.vmem [shape: f32[32,128], index: 14, kind: input, shape index: {}]   ;;  %s1525_s15 = inlined_call_operand.vmem [shape: f32[1,128], index: 15, kind: input, shape index: {}]   ;;  %s1526_s16 = inlined_call_operand.vmem [shape: f32[1,128], index: 16, kind: input, shape index: {}]   ;;  %s1527_s17 = inlined_call_operand.vmem [shape: f32[1,128], index: 17, kind: input, shape index: {}]   ;;  %s1528_s18 = inlined_call_operand.hbm [shape: f32[8,128], index: 18, kind: output, shape index: {}]  }
   0x1   :  { %1529 = sst [smem:[#allocation7_spill]] %s1510_s0 }
   0x2   :  { %1530 = sst [smem:[#allocation8_spill]] %s1511_s1 }
   0x3   :  { %1531 = sst [smem:[#allocation9_spill]] %s1512_s2 }
   0x4   :  { %23 = vsyncpa [#allocation5], 0  ;;  %s1315_s27 = smov 0  }
   0x5 LB: > { %s1321_s28 = sadd.s32 4294967295, %s1210_s27   ;;  %p1101_p0 = scmp.ge.s32.totalorder %s1210_s27, 1  ;;  %s1210_s27 = sphi %s1315_s27, %s29_s27  }
   0x6   : > { %p516_p1 = scmp.lt.s32.totalorder %s1210_s27, 3 }
   0x8   : > { %p517_p2 = pnand %p1101_p0, %p516_p1 }
   0x9   : > { %p568_p3 = scmp.lt.s32.totalorder (!%p517_p2), %s1321_s28, 1  ;;  %s1532_s1 = sld [smem:[#allocation7_spill]] (!%p517_p2) }
   0xa   : > { %520 = sbr.rel (%p517_p2) target bundleno = 1784 (0x6f8), region = 92  ;;  %s1533_s2 = sld [smem:[#allocation8_spill]] (!%p517_p2) }
   0xb   : > { %p1104_p4 = scmp.ne.s32.totalorder (!%p517_p2), %s1321_s28, 0 }
   0xf   : > { %s569_s29 = scalar_select %p568_p3, %s1321_s28, 1 }
  0x10   : > { %579 = sbr.rel (%p1104_p4) target bundleno = 24 (0x18), region = 96 }
  0x11   : > { %s1102_s30 = sshll.u32 %s569_s29, 3 }
  0x12   : > { %s571_s20 = scalar_lea.vmem %s1532_s1, %s1102_s30  ;;  %s1333_s23 = scalar_lea.vmem %s1533_s2, %s1102_s30 }
  0x15   : > { %vm580_vm0 = vcmask 31744   ;;  %v1212_v0 = vmov 0.0  }
  0x16   : > { %581 = vst.msk [vmem:[#allocation2] sm:$0xff] %vm580_vm0, %v1212_v0 }
  0x17   : > { %582 = vst [vmem:[#allocation3] sm:$0xff] %v1212_v0 }
  0x18 PF: > { %v588_v1 = vld [vmem:[%s1514_s4 + $0x18] sm:$0xff]  ;;  %v587_v2 = vld [vmem:[%s1514_s4 + $0x10] sm:$0xff]  ;;  %v586_v3 = vld [vmem:[%s1514_s4 + $0x8] sm:$0xff]  ;;  %vm593_vm1 = vcmask 261120   ;;  %vm622_vm3 = vcmask 523264   ;;  %v1213_v12 = vmov 64.0   ;;  %v751_v49 = vlaneseq }
  0x19   : > { %609 = vmatpush.msra.mxu0 %v588_v1  ;;  %v585_v4 = vld [vmem:[%s1514_s4] sm:$0xff]  ;;  %1150 = vrcp.f32 %v1213_v12  ;;  %v1214_v24 = vmov 0   ;;  %v667_v26 = vld [vmem:[%s1518_s8 + $0x38] sm:$0xff]  ;;  %v666_v27 = vld [vmem:[%s1518_s8 + $0x30] sm:$0xff]  ;;  %v1215_v52 = vmov 0.0   ;;  %vm702_vm9 = vcmask 1043456  }
  0x1a   : > { %v1348_v5 = vld [vmem:[%s571_s20] sm:$0xff]  ;;  %1144 = vset.pattern.permute.xlu1 %v1214_v24  ;;  %1145 = vset.pattern.permute.xlu0 %v1214_v24  ;;  %v665_v28 = vld [vmem:[%s1518_s8 + $0x28] sm:$0xff]  ;;  %v663_v30 = vld [vmem:[%s1518_s8 + $0x18] sm:$0xff]  ;;  %v1389_v50 = vand.u32 127, %v751_v49  ;;  %s1534_s20 = sld [smem:[#allocation9_spill]]  ;;  %vm698_vm10 = vcmask 31744  }
  0x1b   : > { %610 = vmatpush.msra.mxu0 %v587_v2  ;;  %v1146_v6 = vld [vmem:[%s1515_s5] ss:$0 sm:$0xff]  ;;  %683 = vmatpush.msra.mxu1 %v667_v26  ;;  %v662_v31 = vld [vmem:[%s1518_s8 + $0x10] sm:$0xff]  ;;  %v661_v32 = vld [vmem:[%s1518_s8 + $0x8] sm:$0xff]  ;;  %vm792_vm11 = vcmask 64512   ;;  %p1113_p5 = scmp.ne.s32.totalorder %s1321_s28, 1 }
  0x1c   : > { %v584_v25 = vld [vmem:[%s1333_s23] sm:$0xff]  ;;  %v729_v54 = vld [vmem:[%s1513_s3 + $0x18] sm:$0xff]  ;;  %v728_v55 = vld [vmem:[%s1513_s3 + $0x10] sm:$0xff]  ;;  %s1535_s19 = sld [smem:[#allocation9_spill]] (!%p1113_p5) }
  0x1d   : > { %611 = vmatpush.msra.mxu0 %v586_v3  ;;  %754 = vperm.xlu1 %1144, %v584_v25   ;;  %v664_v29 = vld [vmem:[%s1518_s8 + $0x20] sm:$0xff]  ;;  %v727_v57 = vld [vmem:[%s1513_s3 + $0x8] sm:$0xff] }
  0x1e   : > { %684 = vmatpush.msra.mxu1 %v666_v27  ;;  %v660_v33 = vld [vmem:[%s1518_s8] sm:$0xff]  ;;  %742 = vmatpush.msra.mxu3 %v729_v54 }
  0x1f   : > { %612 = vmatpush.msra.mxu0 %v585_v4  ;;  %v1151_v13 = vpop.eup %1150  ;;  %v1147_v43 = vld [vmem:[%s1516_s6] ss:$0 sm:$0xff] }
  0x20   : > { %1105 = vmatmul.msk.f32.vlgmr.msra.gmra.mxu0 %vm593_vm1, %v1348_v5  ;;  %v627_v14 = vmul.f32 64.0, %v1151_v13  ;;  %vm631_vm4 = vweird.f32 %v1151_v13  ;;  %685 = vmatpush.msra.mxu1 %v665_v28  ;;  %v1148_v46 = vld [vmem:[%s1517_s7] ss:$0 sm:$0xff] }
  0x21   : > { %v697_v56 = vld [vmem:[%s1534_s20] sm:$0xf]  ;;  %743 = vmatpush.msra.mxu3 %v728_v55 }
  0x22   : > { %v628_v15 = vsub.f32 1.0, %v627_v14  ;;  %686 = vmatpush.msra.mxu1 %v664_v29  ;;  %1107 = vmatpush.msk.msra.mxu2 %vm702_vm9, %v697_v56  ;;  %v726_v58 = vld [vmem:[%s1513_s3] sm:$0xff] }
  0x23   : > { %744 = vmatpush.msra.mxu3 %v727_v57  ;;  %v1149_v59 = vld [vmem:[%s1519_s9] ss:$0 sm:$0xff] }
  0x24   : > { %v629_v16 = vmul.f32 %v1151_v13, %v628_v15  ;;  %687 = vmatpush.msra.mxu1 %v663_v30  ;;  %v759_v4 = vld [vmem:[#allocation2] sm:$0xff] }
  0x25   : > { %745 = vmatpush.msra.mxu3 %v726_v58 }
  0x26   : > { %v630_v17 = vadd.f32 %v1151_v13, %v629_v16  ;;  %688 = vmatpush.msra.mxu1 %v662_v31  ;;  %1109 = vmatmul.msk.f32.vlgmr.msra.gmra.mxu3 %vm593_vm1, %v1348_v5 }
  0x28   : > { %v632_v18 = vsel %vm631_vm4, %v1151_v13, %v630_v17  ;;  %689 = vmatpush.msra.mxu1 %v661_v32 }
  0x2a   : > { %690 = vmatpush.msra.mxu1 %v660_v33 }
  0x8f   : > { %v755_v51 = vpop.permute.xlu1 %754 }
  0x90   : > { %vm756_vm8 = vcmp.eq.s32.totalorder %v1389_v50, %v755_v51 }
  0x91   : > { %v1110_v53 = vsel %vm756_vm8, 1.0, %v1215_v52 }
  0x92   : > { %760 = vxpose.xlu1.b32.start.end [1/1] (short) (narrow) %v1110_v53, 8 }
  0x9d   : > { %v614_v7 = vpop.f32.mrf.mxu0 }
  0x9e   : > { %v615_v8 = vadd.f32 %v1146_v6, %v614_v7  ;;  %v818_v7 = vld [vmem:[#allocation3] sm:$0xff] }
  0xa0   : > { %v618_v9 = vmul.f32 0.01, %v615_v8  ;;  %vm617_vm2 = vcmp.gt.f32.partialorder %v615_v8, 0.0 }
  0xa2   : > { %v619_v10 = vsel %vm617_vm2, %v615_v8, %v618_v9 }
  0xa3   : > { %v623_v11 = vsel %vm622_vm3, %v619_v10, 0.0 }
  0xa4   : > { %624 = vadd.xlane.f32.xlu0 %v623_v11 }
  0xa9   : > { %v747_v1 = vpop.f32.mrf.mxu3 }
 0x117   : > { %v625_v19 = vpop.xlane.xlu0 %624 }
 0x118   : > { %v633_v20 = vmul.f32 %v632_v18, %v625_v19 }
 0x11a   : > { %v634_v21 = vsub.f32 %v619_v10, %v633_v20 }
 0x11c   : > { %v635_v22 = vmul.f32 %v634_v21, %v634_v21 }
 0x11e   : > { %v636_v23 = vsel %vm622_vm3, %v635_v22, 0.0 }
 0x11f   : > { %637 = vadd.xlane.f32.xlu0 %v636_v23 }
 0x136   : > { %v776_v0 = vpop.trf.xlu1 }
 0x192   : > { %v638_v34 = vpop.xlane.xlu0 %637 }
 0x193   : > { %v639_v35 = vmul.f32 %v638_v34, %v632_v18 }
 0x195   : > { %v640_v36 = vadd.f32 1e-06, %v639_v35 }
 0x197   : > { %1152 = vrsqrt.f32 %v640_v36  ;;  %vm647_vm6 = vweird.f32 %v640_v36 }
 0x19d   : > { %v1153_v37 = vpop.eup %1152 }
 0x19e   : > { %v642_v38 = vmul.f32 %v1153_v37, %v640_v36  ;;  %vm648_vm5 = vweird.f32 %v1153_v37 }
 0x19f   : > { %vm649_vm7 = vmor %vm647_vm6, %vm648_vm5 }
 0x1a0   : > { %v643_v39 = vmul.f32 %v1153_v37, %v642_v38 }
 0x1a2   : > { %v644_v40 = vmul.f32 0.5, %v643_v39 }
 0x1a4   : > { %v645_v41 = vsub.f32 1.5, %v644_v40 }
 0x1a6   : > { %v646_v42 = vmul.f32 %v1153_v37, %v645_v41 }
 0x1a8   : > { %v650_v44 = vsel %vm649_vm7, %v1153_v37, %v646_v42 }
 0x1a9   : > { %v651_v45 = vmul.f32 %v650_v44, %v634_v21 }
 0x1ab   : > { %v655_v47 = vmul.f32 %v1147_v43, %v651_v45 }
 0x1ad   : > { %v659_v48 = vadd.f32 %v1148_v46, %v655_v47 }
 0x1af   : > { %1106 = vmatmul.msk.f32.vlgmr.msra.gmra.mxu1 %vm622_vm3, %v659_v48 }
 0x22c   : > { %v692_v60 = vpop.f32.mrf.mxu1 }
 0x22d   : > { %v693_v61 = vadd.f32 %v1149_v59, %v692_v60 }
 0x22f   : > { %v695_v62 = vmul.f32 1.442695, %v693_v61 }
 0x231   : > { %1154 = vpow2.f32 %v695_v62 }
 0x237   : > { %v1155_v63 = vpop.eup %1154 }
 0x238   : > { %1108 = vmatmul.msk.f32.vlgmr.msra.gmra.mxu2 %vm698_vm10, %v1155_v63 }
 0x239   : > { %811 = vmatpush.msrb.mxu2 %v1155_v63 }
 0x240   : > { %1111 = vmatmul.msk.f32.vlgmr.msrb.gmra.mxu2 %vm792_vm11, %v776_v0 }
 0x2bb   : > { %v723_v2 = vpop.f32.mrf.mxu2 }
 0x2bc   : > { %v750_v3 = vmul.f32 %v747_v1, %v723_v2 }
 0x2be   : > { %834 = vmatpush.msrb.mxu0 %v750_v3 }
 0x2bf   : > { %1112 = vmatmul.msk.f32.vlgmr.msrb.gmra.mxu0 %vm792_vm11, %v776_v0 }
 0x2c3   : > { %v813_v5 = vpop.f32.mrf.mxu2 }
 0x2c4   : > { %v816_v6 = vadd.f32 %v813_v5, %v759_v4 }
 0x2c6   : > { %817 = vst.msk [vmem:[#allocation2] sm:$0xff] %vm698_vm10, %v816_v6 }
 0x33b   : > { %844 = sbr.rel (%p1113_p5) target bundleno = 1779 (0x6f3), region = 100 }
 0x33c   : > { %v836_v8 = vpop.f32.mrf.mxu0 }
 0x33d   : > { %v839_v9 = vadd.f32 %v836_v8, %v818_v7 }
 0x33f   : > { %840 = vst [vmem:[#allocation3] sm:$0xff] %v839_v9 }
 0x340   : > { %v849_v10 = vld [vmem:[%s1535_s19] sm:$0xf]  ;;  %v893_v12 = vld [vmem:[%s1520_s10 + $0x78] sm:$0xff]  ;;  %v892_v13 = vld [vmem:[%s1520_s10 + $0x70] sm:$0xff]  ;;  %v1216_v39 = vmov 32.0   ;;  %vm996_vm3 = vcmp.lt.s32.totalorder %v1389_v50, 16 }
 0x341   : > { %v845_v11 = vld [vmem:[#allocation2] sm:$0xff]  ;;  %1114 = vmatpush.msk.msra.mxu0 %vm702_vm9, %v849_v10  ;;  %898 = vmatpush.msra.mxu1 %v893_v12  ;;  %v891_v14 = vld [vmem:[%s1520_s10 + $0x68] sm:$0xff]  ;;  %v889_v16 = vld [vmem:[%s1520_s10 + $0x58] sm:$0xff] }
 0x342   : > { %1162 = vrcp.f32 %v845_v11  ;;  %v890_v15 = vld [vmem:[%s1520_s10 + $0x60] sm:$0xff]  ;;  %vm846_vm12 = vcmp.gt.f32.partialorder %v845_v11, 0.0  ;;  %v888_v19 = vld [vmem:[%s1520_s10 + $0x50] sm:$0xff]  ;;  %v887_v20 = vld [vmem:[%s1520_s10 + $0x48] sm:$0xff]  ;;  %v1217_v11 = vmov 0.0  }
 0x343   : > { %899 = vmatpush.msra.mxu1 %v892_v13  ;;  %v886_v21 = vld [vmem:[%s1520_s10 + $0x40] sm:$0xff]  ;;  %v885_v22 = vld [vmem:[%s1520_s10 + $0x38] sm:$0xff]  ;;  %v884_v23 = vld [vmem:[%s1520_s10 + $0x30] sm:$0xff]  ;;  %1164 = vrcp.f32 %v1216_v39  ;;  %v1117_v12 = vsel %vm996_vm3, 1.0, %v1217_v11 }
 0x344   : > { %v883_v24 = vld [vmem:[%s1520_s10 + $0x28] sm:$0xff]  ;;  %v882_v25 = vld [vmem:[%s1520_s10 + $0x20] sm:$0xff]  ;;  %v881_v26 = vld [vmem:[%s1520_s10 + $0x18] sm:$0xff] }
 0x345   : > { %900 = vmatpush.msra.mxu1 %v891_v14  ;;  %v880_v27 = vld [vmem:[%s1520_s10 + $0x10] sm:$0xff]  ;;  %v879_v28 = vld [vmem:[%s1520_s10 + $0x8] sm:$0xff]  ;;  %v878_v29 = vld [vmem:[%s1520_s10] sm:$0xff] }
 0x346   : > { %v876_v30 = vld [vmem:[#allocation3] sm:$0xff]  ;;  %v1156_v33 = vld [vmem:[%s1521_s11] ss:$0 sm:$0xff]  ;;  %v963_v52 = vld [vmem:[%s1524_s14 + $0x18] sm:$0xff] }
 0x347   : > { %901 = vmatpush.msra.mxu1 %v890_v15  ;;  %v962_v53 = vld [vmem:[%s1524_s14 + $0x10] sm:$0xff]  ;;  %983 = vmatpush.msra.mxu2 %v963_v52  ;;  %v961_v54 = vld [vmem:[%s1524_s14 + $0x8] sm:$0xff]  ;;  %v960_v55 = vld [vmem:[%s1524_s14] sm:$0xff]  ;;  %v1218_v15 = vmov 16.0  }
 0x348   : > { %v1163_v17 = vpop.eup %1162  ;;  %v1157_v1 = vld [vmem:[%s1522_s12] ss:$0 sm:$0xff] }
 0x349   : > { %v848_v18 = vsel %vm846_vm12, %v1163_v17, 0.0  ;;  %902 = vmatpush.msra.mxu1 %v889_v16  ;;  %v1165_v40 = vpop.eup %1164  ;;  %984 = vmatpush.msra.mxu2 %v962_v53  ;;  %v1158_v4 = vld [vmem:[%s1523_s13] ss:$0 sm:$0xff] }
 0x34a   : > { %1115 = vmatmul.msk.f32.vlgmr.msra.gmra.mxu0 %vm698_vm10, %v848_v18  ;;  %v927_v41 = vmul.f32 32.0, %v1165_v40  ;;  %vm931_vm14 = vweird.f32 %v1165_v40  ;;  %v1159_v7 = vld [vmem:[%s1525_s15] ss:$0 sm:$0xff] }
 0x34b   : > { %903 = vmatpush.msra.mxu1 %v888_v19  ;;  %985 = vmatpush.msra.mxu2 %v961_v54 }
 0x34c   : > { %v928_v42 = vsub.f32 1.0, %v927_v41 }
 0x34d   : > { %904 = vmatpush.msra.mxu1 %v887_v20  ;;  %986 = vmatpush.msra.mxu2 %v960_v55 }
 0x34e   : > { %v929_v43 = vmul.f32 %v1165_v40, %v928_v42 }
 0x34f   : > { %905 = vmatpush.msra.mxu1 %v886_v21 }
 0x350   : > { %v930_v44 = vadd.f32 %v1165_v40, %v929_v43 }
 0x351   : > { %906 = vmatpush.msra.mxu1 %v885_v22 }
 0x352   : > { %v932_v45 = vsel %vm931_vm14, %v1165_v40, %v930_v44 }
 0x353   : > { %907 = vmatpush.msra.mxu1 %v884_v23 }
 0x355   : > { %908 = vmatpush.msra.mxu1 %v883_v24 }
 0x357   : > { %909 = vmatpush.msra.mxu1 %v882_v25 }
 0x359   : > { %910 = vmatpush.msra.mxu1 %v881_v26 }
 0x35b   : > { %911 = vmatpush.msra.mxu1 %v880_v27 }
 0x35d   : > { %912 = vmatpush.msra.mxu1 %v879_v28 }
 0x35f   : > { %913 = vmatpush.msra.mxu1 %v878_v29 }
 0x3c7   : > { %v873_v31 = vpop.f32.mrf.mxu0 }
 0x3c8   : > { %v877_v32 = vmul.f32 %v876_v30, %v873_v31 }
 0x3ca   : > { %914 = vmatmul.f32.vlgmr.msra.gmra.mxu1 %v877_v32 }
 0x447   : > { %v915_v34 = vpop.f32.mrf.mxu1 }
 0x448   : > { %v916_v35 = vadd.f32 %v1156_v33, %v915_v34 }
 0x44a   : > { %v919_v36 = vmul.f32 0.01, %v916_v35  ;;  %vm918_vm13 = vcmp.gt.f32.partialorder %v916_v35, 0.0 }
 0x44c   : > { %v920_v37 = vsel %vm918_vm13, %v916_v35, %v919_v36  ;;  %v1160_v35 = vld [vmem:[%s1526_s16] ss:$0 sm:$0xff] }
 0x44d   : > { %v923_v38 = vsel %vm593_vm1, %v920_v37, 0.0 }
 0x44e   : > { %924 = vadd.xlane.f32.xlu0 %v923_v38 }
 0x4c1   : > { %v925_v46 = vpop.xlane.xlu0 %924 }
 0x4c2   : > { %v933_v47 = vmul.f32 %v932_v45, %v925_v46 }
 0x4c4   : > { %v934_v48 = vsub.f32 %v920_v37, %v933_v47  ;;  %v1161_v37 = vld [vmem:[%s1527_s17] ss:$0 sm:$0xff] }
 0x4c6   : > { %v935_v49 = vmul.f32 %v934_v48, %v934_v48 }
 0x4c8   : > { %v936_v51 = vsel %vm593_vm1, %v935_v49, 0.0 }
 0x4c9   : > { %937 = vadd.xlane.f32.xlu0 %v936_v51 }
 0x53c   : > { %v938_v56 = vpop.xlane.xlu0 %937 }
 0x53d   : > { %v939_v57 = vmul.f32 %v938_v56, %v932_v45 }
 0x53f   : > { %v940_v58 = vadd.f32 1e-06, %v939_v57 }
 0x541   : > { %1166 = vrsqrt.f32 %v940_v58  ;;  %vm947_vm0 = vweird.f32 %v940_v58 }
 0x542   : > { %1168 = vrcp.f32 %v1218_v15 }
 0x547   : > { %v1167_v59 = vpop.eup %1166 }
 0x548   : > { %v942_v60 = vmul.f32 %v1167_v59, %v940_v58  ;;  %vm948_vm15 = vweird.f32 %v1167_v59  ;;  %v1169_v16 = vpop.eup %1168 }
 0x549   : > { %vm949_vm2 = vmor %vm947_vm0, %vm948_vm15  ;;  %v1003_v17 = vmul.f32 16.0, %v1169_v16 }
 0x54a   : > { %v943_v61 = vmul.f32 %v1167_v59, %v942_v60 }
 0x54b   : > { %v1004_v18 = vsub.f32 1.0, %v1003_v17 }
 0x54c   : > { %v944_v62 = vmul.f32 0.5, %v943_v61 }
 0x54d   : > { %v1005_v19 = vmul.f32 %v1169_v16, %v1004_v18 }
 0x54e   : > { %v945_v63 = vsub.f32 1.5, %v944_v62 }
 0x54f   : > { %v1006_v20 = vadd.f32 %v1169_v16, %v1005_v19 }
 0x550   : > { %v946_v0 = vmul.f32 %v1167_v59, %v945_v63 }
 0x552   : > { %v950_v2 = vsel %vm949_vm2, %v1167_v59, %v946_v0 }
 0x553   : > { %v951_v3 = vmul.f32 %v950_v2, %v934_v48 }
 0x555   : > { %v955_v5 = vmul.f32 %v1157_v1, %v951_v3 }
 0x557   : > { %v959_v6 = vadd.f32 %v1158_v4, %v955_v5 }
 0x559   : > { %1116 = vmatmul.msk.f32.vlgmr.msra.gmra.mxu2 %vm593_vm1, %v959_v6  ;;  %vm1007_vm1 = vweird.f32 %v1169_v16 }
 0x55a   : > { %v1008_v21 = vsel %vm1007_vm1, %v1169_v16, %v1006_v20 }
 0x5dc   : > { %v988_v8 = vpop.f32.mrf.mxu2 }
 0x5dd   : > { %v989_v9 = vadd.f32 %v1159_v7, %v988_v8 }
 0x5df   : > { %v992_v10 = vmul.f32 0.01, %v989_v9  ;;  %vm991_vm4 = vcmp.gt.f32.partialorder %v989_v9, 0.0 }
 0x5e1   : > { %v993_v13 = vsel %vm991_vm4, %v989_v9, %v992_v10 }
 0x5e2   : > { %v999_v14 = vmul.f32 %v1117_v12, %v993_v13 }
 0x5e4   : > { %1000 = vadd.xlane.f32.xlu1 %v999_v14 }
 0x657   : > { %v1001_v22 = vpop.xlane.xlu1 %1000 }
 0x658   : > { %v1009_v23 = vmul.f32 %v1008_v21, %v1001_v22 }
 0x65a   : > { %v1010_v50 = vsub.f32 %v993_v13, %v1009_v23 }
 0x65c   : > { %v1011_v24 = vmul.f32 %v1117_v12, %v1010_v50 }
 0x65e   : > { %v1012_v25 = vmul.f32 %v1011_v24, %v1011_v24 }
 0x660   : > { %1013 = vadd.xlane.f32.xlu1 %v1012_v25 }
 0x6d3   : > { %v1014_v26 = vpop.xlane.xlu1 %1013 }
 0x6d4   : > { %v1015_v27 = vmul.f32 %v1014_v26, %v1008_v21 }
 0x6d6   : > { %v1016_v28 = vadd.f32 1e-06, %v1015_v27 }
 0x6d8   : > { %1170 = vrsqrt.f32 %v1016_v28  ;;  %vm1023_vm6 = vweird.f32 %v1016_v28 }
 0x6de   : > { %v1171_v29 = vpop.eup %1170 }
 0x6df   : > { %v1018_v30 = vmul.f32 %v1171_v29, %v1016_v28  ;;  %vm1024_vm5 = vweird.f32 %v1171_v29 }
 0x6e0   : > { %vm1025_vm7 = vmor %vm1023_vm6, %vm1024_vm5 }
 0x6e1   : > { %v1019_v31 = vmul.f32 %v1171_v29, %v1018_v30 }
 0x6e3   : > { %v1020_v32 = vmul.f32 0.5, %v1019_v31 }
 0x6e5   : > { %v1021_v33 = vsub.f32 1.5, %v1020_v32 }
 0x6e7   : > { %v1022_v34 = vmul.f32 %v1171_v29, %v1021_v33 }
 0x6e9   : > { %v1026_v36 = vsel %vm1025_vm7, %v1171_v29, %v1022_v34 }
 0x6ea   : > { %v1027_v38 = vmul.f32 %v1026_v36, %v1011_v24 }
 0x6ec   : > { %v1031_v39 = vmul.f32 %v1160_v35, %v1027_v38 }
 0x6ee   : > { %v1035_v40 = vadd.f32 %v1161_v37, %v1031_v39 }
 0x6f0   : > { %v1036_v41 = vmul.f32 %v1117_v12, %v1035_v40 }
 0x6f2   : > { %1037 = vst [vmem:[#allocation4] sm:$0xff] %v1036_v41 }
 0x6f3 PF: > { %p1126_p6 = scmp.eq.s32.totalorder %s1321_s28, 1  ;;  %s1219_s1 = smov [#allocation4]  }
 0x6f4   : > { %s1044_s21 = sshll.u32 %s1219_s1, 4  ;;  %s1046_s2 = sshll.u32 %s1528_s18, 4  ;;  %s1045_s21 = int_to_ptr.vmem [resolvable:$true] %s1044_s21  ;;  %s1047_s2 = int_to_ptr.hbm [resolvable:$true] %s1046_s2 }
 0x6f5   : > { %1123 = dma.vmem_to_hbm [thread:$0]  (%p1126_p6), %s1045_s21, 128, %s1047_s2, [#allocation5]  }
 0x6f6   : > { %1205 = dma.done.wait (%p1126_p6), [#allocation5], 128  }
 0x6f7   : > { %1207 = vsyncadd (%p1126_p6), [#allocation5], 4294967168 }
 0x6f8 PF: > { %s29_s27 = sadd.s32 1, %s1210_s27  }
 0x6f9   : > { %p26_p7 = scmp.ge.s32.totalorder %s29_s27, 4  }
 0x6fb   :  { %28 = sbr.rel (!%p26_p7) target bundleno = 5 (0x5), region = 130 }
 0x700   :  { %1060 = vsyncpa [#allocation5], 1 }
 0x701   :  { %1062 = vsyncpa [#allocation5 + $0x1], 1 }

</bundles_post_ra>
